<compile_context>
chip_gen: v5e
topology: v5e:2x2
jax: 0.10.0
libtpu: 0.0.40
codegen_flags: <defaults>
</compile_context>

<pallas_src>
import jax
import jax.numpy as jnp
from jax import lax
from jax.experimental import pallas as pl
from jax.experimental.pallas import tpu as pltpu

ELMO_DIM = 128   # scaled-down stand-in for the real 1024
BN_EPS = 1e-5


def elmo_head_kernel(rep0_ref, rep1_ref, inv_len_ref, w_ref, b_ref,
                     out_ref, acc_ref):
    """Grid = (B_pad // b_tile, S_pad // s_tile); the S axis is the reduction axis."""
    s_idx = pl.program_id(1)
    D = rep0_ref.shape[2]

    @pl.when(s_idx == 0)
    def _init():
        acc_ref[...] = jnp.zeros_like(acc_ref)

    # Sequence pooling: running f32 sums over the S tiles ([b_tile, s_tile, D]).
    # dtype=f32 fuses the bf16->f32 convert into the reduce (no f32 tile copy).
    acc_ref[:, :D] += jnp.sum(rep0_ref[...], axis=1, dtype=jnp.float32)
    acc_ref[:, D:] += jnp.sum(rep1_ref[...], axis=1, dtype=jnp.float32)

    @pl.when(s_idx == pl.num_programs(1) - 1)
    def _finalize():
        # concat([l0, l1]) @ W == acc(b, 2D) @ W(2D, C); the per-row 1/length
        # scalar commutes with the matmul, so apply it afterwards.
        logits = jnp.dot(acc_ref[...], w_ref[...],
                         preferred_element_type=jnp.float32)
        # BatchNorm is already folded into w_ref / b_ref; dropout = identity.
        out_ref[...] = logits * inv_len_ref[...] + b_ref[...]


def _round_up(x, m):
    return ((x + m - 1) // m) * m


def _tpu_generation():
    try:
        kind = jax.devices()[0].device_kind.lower()
    except Exception:
        return "unknown"
    if "7" in kind:
        return "v7x"
    if "v5 lite" in kind or "v5e" in kind or "v5lite" in kind:
        return "v5e"
    if "v6" in kind:
        return "v6e"
    return "other"


def elmo_model_forward(rep0, rep1, lengths, params, *, b_tile=None, s_tile=None):
    """rep0, rep1: [B, S, D]; lengths: [B] or [B, 1] float (true token counts)."""
    B, S, D = rep0.shape
    C = params["w"].shape[1]
    assert params["w"].shape[0] == 2 * D

    # --- generation-aware tile caps / VMEM budget -------------------------
    gen = _tpu_generation()
    if gen == "v5e":
        vmem_limit = 100 * 1024 * 1024          # 128 MiB physical; default scoped is only 16
        b_cap, s_cap = 128, 128                 # 128x128 MXU, slowest HBM -> biggest tiles
    elif gen == "v6e":
        vmem_limit = 100 * 1024 * 1024          # 128 MiB physical
        b_cap, s_cap = 64, 128                  # grow the cheap (s) axis
    elif gen == "v7x":
        vmem_limit = 48 * 1024 * 1024           # 64 MiB physical -> keep headroom
        b_cap, s_cap = 64, 64
    else:                                       # unknown: be conservative
        vmem_limit = 48 * 1024 * 1024
        b_cap, s_cap = 64, 64

    if gen == "v7x":
        # 2 TensorCores per chip: keep >= 2 steps on the parallel batch axis.
        b_cap = min(b_cap, max(8, _round_up(B, 16) // 2))

    if b_tile is None:
        b_tile = min(b_cap, _round_up(B, 8))
    if s_tile is None:
        s_tile = min(s_cap, _round_up(S, 16))
    assert b_tile % 8 == 0, "b_tile must be a multiple of 8"
    assert s_tile % 16 == 0, "s_tile must be a multiple of 16 (bf16 sublane packing)"

    # --- pad to tile multiples (zero rows are exact: we divide by true len) ---
    B_pad = _round_up(B, b_tile)
    S_pad = _round_up(S, s_tile)
    C_pad = _round_up(C, 128)                   # lane-dense output / MXU N dim

    rep0 = rep0.astype(jnp.bfloat16)
    rep1 = rep1.astype(jnp.bfloat16)
    if (B_pad, S_pad) != (B, S):
        pad = ((0, B_pad - B), (0, S_pad - S), (0, 0))
        rep0 = jnp.pad(rep0, pad)
        rep1 = jnp.pad(rep1, pad)

    inv_len = (1.0 / lengths.astype(jnp.float32)).reshape(B, 1)
    if B_pad != B:
        inv_len = jnp.pad(inv_len, ((0, B_pad - B), (0, 0)), constant_values=1.0)

    # Fold BatchNorm1d (inference, running stats) into the Linear weights/bias.
    scale = params["gamma"] * lax.rsqrt(params["running_var"] + BN_EPS)          # [C]
    w_fused = (params["w"].astype(jnp.float32) * scale[None, :])                 # [2D, C]
    b_fused = (scale * (params["b"] - params["running_mean"])
               + params["beta"]).reshape(1, C).astype(jnp.float32)               # [1, C]
    if C_pad != C:
        w_fused = jnp.pad(w_fused, ((0, 0), (0, C_pad - C)))
        b_fused = jnp.pad(b_fused, ((0, 0), (0, C_pad - C)))

    grid = (B_pad // b_tile, S_pad // s_tile)
    out = pl.pallas_call(
        elmo_head_kernel,
        out_shape=jax.ShapeDtypeStruct((B_pad, C_pad), jnp.float32),
        grid_spec=pltpu.PrefetchScalarGridSpec(
            num_scalar_prefetch=0,
            grid=grid,
            in_specs=[
                pl.BlockSpec((b_tile, s_tile, D), lambda b, s: (b, s, 0)),   # rep0 (bf16)
                pl.BlockSpec((b_tile, s_tile, D), lambda b, s: (b, s, 0)),   # rep1 (bf16)
                pl.BlockSpec((b_tile, 1), lambda b, s: (b, 0)),              # 1/len
                pl.BlockSpec((2 * D, C_pad), lambda b, s: (0, 0)),           # W' (BN-folded)
                pl.BlockSpec((1, C_pad), lambda b, s: (0, 0)),               # b' (BN-folded)
            ],
            out_specs=pl.BlockSpec((b_tile, C_pad), lambda b, s: (b, 0)),
            scratch_shapes=[pltpu.VMEM((b_tile, 2 * D), jnp.float32)],
        ),
        compiler_params=pltpu.CompilerParams(
            dimension_semantics=("parallel", "arbitrary"),
            vmem_limit_bytes=vmem_limit,
        ),
    )(rep0, rep1, inv_len, w_fused, b_fused)

    return out[:B, :C]


def reference_forward(rep0, rep1, lengths, params):
    lengths = lengths.reshape(-1, 1).astype(jnp.float32)
    l0 = rep0.astype(jnp.float32).sum(axis=1) / lengths
    l1 = rep1.astype(jnp.float32).sum(axis=1) / lengths
    layer = jnp.concatenate([l0, l1], axis=1)
    logits = layer @ params["w"] + params["b"]
    inv_std = 1.0 / jnp.sqrt(params["running_var"] + BN_EPS)
    return (logits - params["running_mean"]) * inv_std * params["gamma"] + params["beta"]


if __name__ == "__main__":
    # Small shapes chosen to exercise every path: S=24 is not a multiple of the
    # 16-row bf16 s_tile (seq padding), n_classes=120 is not a multiple of 128
    # (lane padding), and b_tile=8 / s_tile=16 give a 2x2 grid.
    B, S, D = 16, 24, ELMO_DIM
    n_classes = 120

    key = jax.random.PRNGKey(0)
    k_rep0, k_rep1, k_len, k_w, k_b, k_g, k_beta, k_mean, k_var = jax.random.split(key, 9)

    # ELMo representations fed as bf16 (the HBM-bound input); everything else f32.
    rep0 = jax.random.normal(k_rep0, (B, S, D), dtype=jnp.float32).astype(jnp.bfloat16)
    rep1 = jax.random.normal(k_rep1, (B, S, D), dtype=jnp.float32).astype(jnp.bfloat16)
    lengths = jax.random.randint(k_len, (B, 1), 1, S + 1).astype(jnp.float32)

    # Classifier parameters: Linear(2*D, n_classes) + BatchNorm1d(n_classes)
    params = {
        "w": jax.random.normal(k_w, (2 * D, n_classes), dtype=jnp.float32)
             * (1.0 / jnp.sqrt(2.0 * D)),
        "b": jax.random.normal(k_b, (n_classes,), dtype=jnp.float32) * 0.01,
        "gamma": 1.0 + 0.1 * jax.random.normal(k_g, (n_classes,), dtype=jnp.float32),
        "beta": 0.1 * jax.random.normal(k_beta, (n_classes,), dtype=jnp.float32),
        "running_mean": 0.1 * jax.random.normal(k_mean, (n_classes,), dtype=jnp.float32),
        "running_var": jnp.abs(1.0 + 0.1 * jax.random.normal(k_var, (n_classes,),
                                                             dtype=jnp.float32)),
    }

    out = elmo_model_forward(rep0, rep1, lengths, params, b_tile=8, s_tile=16)
    out = jax.block_until_ready(out)

    ref = reference_forward(rep0, rep1, lengths, params)
    assert out.shape == (B, n_classes)
    assert jnp.allclose(out, ref, atol=5e-4, rtol=5e-4), "mismatch vs reference"

    print("KERNEL_OK")
</pallas_src>

<mosaic_0001>
module attributes {stable_mosaic.version = 11 : i64} {
  func.func @elmo_head_kernel(%arg0: i32, %arg1: i32, %arg2: memref<8x16x128xbf16, #tpu.memory_space<vmem>>, %arg3: memref<8x16x128xbf16, #tpu.memory_space<vmem>>, %arg4: memref<8x1xf32, #tpu.memory_space<vmem>>, %arg5: memref<256x128xf32, #tpu.memory_space<vmem>>, %arg6: memref<1x128xf32, #tpu.memory_space<vmem>>, %arg7: memref<8x128xf32, #tpu.memory_space<vmem>>, %arg8: memref<8x256xf32, #tpu.memory_space<vmem>>) attributes {dimension_semantics = [#tpu.dimension_semantics<parallel>, #tpu.dimension_semantics<arbitrary>], iteration_bounds = array<i64: 2, 2>, scalar_prefetch = 0 : i64, scratch_operands = 1 : i64, tpu.core_type = #tpu.core_type<tc>, window_params = [{transform_indices = @transform_0, window_bounds = array<i64: 8, 16, 128>}, {transform_indices = @transform_1, window_bounds = array<i64: 8, 16, 128>}, {transform_indices = @transform_2, window_bounds = array<i64: 8, 1>}, {pipeline_mode = #tpu.pipeline_mode<synchronous>, transform_indices = @transform_3, window_bounds = array<i64: 256, 128>}, {pipeline_mode = #tpu.pipeline_mode<synchronous>, transform_indices = @transform_4, window_bounds = array<i64: 1, 128>}, {transform_indices = @transform_5, window_bounds = array<i64: 8, 128>}]} {
    %c0_i32 = arith.constant 0 : i32
    %0 = arith.cmpi eq, %arg1, %c0_i32 : i32
    %1 = arith.extui %0 : i1 to i32
    %c0_i32_0 = arith.constant 0 : i32
    %2 = arith.cmpi ne, %1, %c0_i32_0 : i32
    scf.if %2 {
      %cst_15 = arith.constant 0.000000e+00 : f32
      %18 = vector.broadcast %cst_15 : f32 to vector<8x256xf32>
      %c0_16 = arith.constant 0 : index
      %c0_17 = arith.constant 0 : index
      %19 = vector.load %arg8[%c0_16, %c0_17] : memref<8x256xf32, #tpu.memory_space<vmem>>, vector<8x256xf32>
      tpu.vector_store %arg8[%c0_16, %c0_17], %18 {strides = array<i32>} : memref<8x256xf32, #tpu.memory_space<vmem>>, vector<8x256xf32>,
    } else {
    }
    %c0 = arith.constant 0 : index
    %c0_1 = arith.constant 0 : index
    %3 = vector.load %arg8[%c0, %c0_1] : memref<8x256xf32, #tpu.memory_space<vmem>>, vector<8x128xf32>
    %c0_2 = arith.constant 0 : index
    %c0_3 = arith.constant 0 : index
    %c0_4 = arith.constant 0 : index
    %4 = vector.load %arg2[%c0_2, %c0_3, %c0_4] : memref<8x16x128xbf16, #tpu.memory_space<vmem>>, vector<8x16x128xbf16>
    %5 = arith.extf %4 : vector<8x16x128xbf16> to vector<8x16x128xf32>
    %cst = arith.constant dense<0.000000e+00> : vector<8x128xf32>
    %6 = vector.multi_reduction <add>, %5, %cst [1] : vector<8x16x128xf32> to vector<8x128xf32>
    %7 = arith.addf %3, %6 : vector<8x128xf32>
    %c0_5 = arith.constant 0 : index
    %c0_6 = arith.constant 0 : index
    %8 = vector.load %arg8[%c0_5, %c0_6] : memref<8x256xf32, #tpu.memory_space<vmem>>, vector<8x128xf32>
    tpu.vector_store %arg8[%c0_5, %c0_6], %7 {strides = array<i32>} : memref<8x256xf32, #tpu.memory_space<vmem>>, vector<8x128xf32>,
    %c0_7 = arith.constant 0 : index
    %c128 = arith.constant 128 : index
    %9 = vector.load %arg8[%c0_7, %c128] : memref<8x256xf32, #tpu.memory_space<vmem>>, vector<8x128xf32>
    %c0_8 = arith.constant 0 : index
    %c0_9 = arith.constant 0 : index
    %c0_10 = arith.constant 0 : index
    %10 = vector.load %arg3[%c0_8, %c0_9, %c0_10] : memref<8x16x128xbf16, #tpu.memory_space<vmem>>, vector<8x16x128xbf16>
    %11 = arith.extf %10 : vector<8x16x128xbf16> to vector<8x16x128xf32>
    %cst_11 = arith.constant dense<0.000000e+00> : vector<8x128xf32>
    %12 = vector.multi_reduction <add>, %11, %cst_11 [1] : vector<8x16x128xf32> to vector<8x128xf32>
    %13 = arith.addf %9, %12 : vector<8x128xf32>
    %c0_12 = arith.constant 0 : index
    %c128_13 = arith.constant 128 : index
    %14 = vector.load %arg8[%c0_12, %c128_13] : memref<8x256xf32, #tpu.memory_space<vmem>>, vector<8x128xf32>
    tpu.vector_store %arg8[%c0_12, %c128_13], %13 {strides = array<i32>} : memref<8x256xf32, #tpu.memory_space<vmem>>, vector<8x128xf32>,
    %c1_i32 = arith.constant 1 : i32
    %15 = arith.cmpi eq, %arg1, %c1_i32 : i32
    %16 = arith.extui %15 : i1 to i32
    %c0_i32_14 = arith.constant 0 : i32
    %17 = arith.cmpi ne, %16, %c0_i32_14 : i32
    scf.if %17 {
      %c0_15 = arith.constant 0 : index
      %c0_16 = arith.constant 0 : index
      %18 = vector.load %arg8[%c0_15, %c0_16] : memref<8x256xf32, #tpu.memory_space<vmem>>, vector<8x256xf32>
      %c0_17 = arith.constant 0 : index
      %c0_18 = arith.constant 0 : index
      %19 = vector.load %arg5[%c0_17, %c0_18] : memref<256x128xf32, #tpu.memory_space<vmem>>, vector<256x128xf32>
      %cst_19 = arith.constant dense<0.000000e+00> : vector<8x128xf32>
      %20 = tpu.matmul %18, %19, %cst_19 {dimension_numbers = #tpu.dot_dimension_numbers<[1], [0], [0], [1], [0, 0, 1, 1], [], []>} : vector<8x256xf32>, vector<256x128xf32>, vector<8x128xf32> -> vector<8x128xf32>
      %c0_20 = arith.constant 0 : index
      %c0_21 = arith.constant 0 : index
      %21 = vector.load %arg4[%c0_20, %c0_21] : memref<8x1xf32, #tpu.memory_space<vmem>>, vector<8x1xf32>
      %22 = vector.broadcast %21 : vector<8x1xf32> to vector<8x128xf32>
      %23 = arith.mulf %20, %22 : vector<8x128xf32>
      %c0_22 = arith.constant 0 : index
      %c0_23 = arith.constant 0 : index
      %24 = vector.load %arg6[%c0_22, %c0_23] : memref<1x128xf32, #tpu.memory_space<vmem>>, vector<1x128xf32>
      %25 = vector.broadcast %24 : vector<1x128xf32> to vector<8x128xf32>
      %26 = arith.addf %23, %25 : vector<8x128xf32>
      %c0_24 = arith.constant 0 : index
      %c0_25 = arith.constant 0 : index
      %27 = vector.load %arg7[%c0_24, %c0_25] : memref<8x128xf32, #tpu.memory_space<vmem>>, vector<8x128xf32>
      tpu.vector_store %arg7[%c0_24, %c0_25], %26 {strides = array<i32>} : memref<8x128xf32, #tpu.memory_space<vmem>>, vector<8x128xf32>,
    } else {
    }
    return
  }
  func.func @transform_0(%arg0: i32, %arg1: i32) -> (i32, i32, i32) {
    %c0_i32 = arith.constant 0 : i32
    %c0_i32_0 = arith.constant 0 : i32
    return %arg0, %arg1, %c0_i32 : i32, i32, i32
  }
  func.func @transform_1(%arg0: i32, %arg1: i32) -> (i32, i32, i32) {
    %c0_i32 = arith.constant 0 : i32
    %c0_i32_0 = arith.constant 0 : i32
    return %arg0, %arg1, %c0_i32 : i32, i32, i32
  }
  func.func @transform_2(%arg0: i32, %arg1: i32) -> (i32, i32) {
    %c0_i32 = arith.constant 0 : i32
    %c0_i32_0 = arith.constant 0 : i32
    return %arg0, %c0_i32 : i32, i32
  }
  func.func @transform_3(%arg0: i32, %arg1: i32) -> (i32, i32) {
    %c0_i32 = arith.constant 0 : i32
    %c0_i32_0 = arith.constant 0 : i32
    %c0_i32_1 = arith.constant 0 : i32
    return %c0_i32, %c0_i32_0 : i32, i32
  }
  func.func @transform_4(%arg0: i32, %arg1: i32) -> (i32, i32) {
    %c0_i32 = arith.constant 0 : i32
    %c0_i32_0 = arith.constant 0 : i32
    %c0_i32_1 = arith.constant 0 : i32
    return %c0_i32, %c0_i32_0 : i32, i32
  }
  func.func @transform_5(%arg0: i32, %arg1: i32) -> (i32, i32) {
    %c0_i32 = arith.constant 0 : i32
    %c0_i32_0 = arith.constant 0 : i32
    return %arg0, %c0_i32 : i32, i32
  }
}

</mosaic_0001>

<bundles_post_ra>
// kernel: tpu_custom_call.1
= control target key start
LH: loop header
LB: loop body
LE: loop exit
PB: predicated region body
PF: predicated region fallthrough
CT: control target
= control target key end

     0   :  { %s1616_s0 = inlined_call_operand.hbm [shape: bf16[16,32,128], index: 0, kind: input, shape index: {}]   ;;  %s1617_s1 = inlined_call_operand.hbm [shape: bf16[16,32,128], index: 1, kind: input, shape index: {}]   ;;  %s1618_s2 = inlined_call_operand.vmem [shape: f32[16,1], index: 2, kind: input, shape index: {}]   ;;  %s1619_s3 = inlined_call_operand.hbm [shape: f32[256,128], index: 3, kind: input, shape index: {}]   ;;  %s1620_s4 = inlined_call_operand.vmem [shape: f32[1,128], index: 4, kind: input, shape index: {}]   ;;  %s1621_s5 = inlined_call_operand.hbm [shape: f32[16,128], index: 5, kind: output, shape index: {}]  }
   0x1   :  { %1628 = sst [smem:[#allocation28_spill]] %s1616_s0 }
   0x2   :  { %1629 = sst [smem:[#allocation29_spill]] %s1619_s3 }
   0x3   :  { %10 = vsyncpa [#allocation4], 0 }
   0x4   :  { %12 = vsyncpa [#allocation4 + $0x1], 0 }
   0x5   :  { %13 = vsyncpa [#allocation7], 0 }
   0x6   :  { %15 = vsyncpa [#allocation7 + $0x1], 0 }
   0x7   :  { %16 = vsyncpa [#allocation5], 0 }
   0x8   :  { %18 = vsyncpa [#allocation5 + $0x1], 0  ;;  %s1323_s18 = smov 0   ;;  %s1325_s19 = smov 0  }
   0x9   :  { %s1327_s20 = smov 0   ;;  %s1329_s21 = smov 0  }
   0xa   :  { %s1331_s22 = smov 0   ;;  %s1333_s23 = smov 0  }
   0xb   :  { %s1335_s24 = smov 0   ;;  %s1337_s25 = smov 0  }
   0xc   :  { %s1339_s26 = smov 0   ;;  %s1341_s27 = smov 0  }
   0xd   :  { %s1343_s28 = smov 0  }
   0xe LB: > { %1630 = sst [smem:[#allocation20_spill]] %s1242_s20  ;;  %s1377_s29 = sadd.s32 4294967295, %s1274_s28   ;;  %s1274_s28 = sphi %s1343_s28, %s24_s28   ;;  %s1270_s27 = sphi %s1341_s27, %s1652_s27   ;;  %s1266_s26 = sphi %s1339_s26, %s1651_s26   ;;  %s1262_s25 = sphi %s1337_s25, %s1650_s25   ;;  %s1258_s24 = sphi %s1335_s24, %s1649_s24   ;;  %s1254_s23 = sphi %s1333_s23, %s1648_s23   ;;  %s1250_s22 = sphi %s1331_s22, %s1656_s22   ;;  %s1246_s21 = sphi %s1329_s21, %s1655_s21   ;;  %s1242_s20 = sphi %s1327_s20, %s1646_s20   ;;  %s1238_s19 = sphi %s1325_s19, %s1654_s19   ;;  %s1234_s18 = sphi %s1323_s18, %s1653_s18  }
   0xf   : > { %1631 = sst [smem:[#allocation21_spill]] %s1254_s23  ;;  %s862_s30 = sadd.s32 4294967294, %s1274_s28  }
  0x10   : > { %1632 = sst [smem:[#allocation22_spill]] %s1266_s26  ;;  %s33_s6 = sadd.s32 1, %s1266_s26 }
  0x11   : > { %1633 = sst [smem:[#allocation23_spill]] %s1270_s27  ;;  %s36_s7 = sadd.s32 1, %s1270_s27 }
  0x12   : > { %p34_p0 = scmp.ge.s32.totalorder %s33_s6, 2  ;;  %s45_s8 = sadd.s32 1, %s1254_s23 }
  0x13   : > { %p52_p1 = scmp.ne.s32.totalorder %s1254_s23, %s1250_s22  ;;  %p53_p2 = scmp.eq.s32.totalorder %s1274_s28, 0 }
  0x14   : > { %s1658_s6 = smov (%p34_p0, %s33_s6), 0  ;;  %s1660_s7 = smov (!%p34_p0, %s36_s7), %s1270_s27 }
  0x15   : > { %1634 = sst [smem:[#allocation24_spill]] %s1658_s6  ;;  %s41_s9 = ssub.s32 %s1266_s26, %s1658_s6 }
  0x16   : > { %p1391_p3 = por %p53_p2, %p52_p1  ;;  %p38_p4 = scmp.ge.s32.totalorder %s1660_s7, 2 }
  0x17   : > { %p58_p5 = scmp.ne.s32.totalorder %s1250_s22, %s1246_s21  ;;  %p59_p6 = scmp.eq.s32.totalorder %s1377_s29, 0 }
  0x18   : > { %s167_s11 = sadd.s32 1, %s1242_s20  ;;  %s1662_s7 = smov (%p38_p4, %s1660_s7), 0 }
  0x19   : > { %1636 = sst [smem:[#allocation25_spill]] %s1662_s7  ;;  %p1402_p7 = por %p59_p6, %p58_p5 }
  0x1a   : > { %p177_p8 = scmp.ne.s32.totalorder %s1242_s20, %s1238_s19  ;;  %s40_s13 = ssub.s32 %s1270_s27, %s1662_s7 }
  0x1b   : > { %p178_p9 = scmp.eq.s32.totalorder %s1377_s29, 3  ;;  %s42_s14 = sor.u32 %s41_s9, %s40_s13 }
  0x1c   : > { %p165_p10 = scmp.eq.s32.totalorder %s40_s13, 0  ;;  %p43_p11 = scmp.eq.s32.totalorder %s42_s14, 0 }
  0x1d   : > { %p1411_p12 = por %p178_p9, %p177_p8  ;;  %p183_p13 = scmp.ne.s32.totalorder %s1238_s19, %s1234_s18 }
  0x1e   : > { %s1416_s16 = scalar_select %p165_p10, %s1242_s20, %s167_s11  }
  0x1f   : > { %s1419_s17 = scalar_select %p43_p11, %s1254_s23, %s45_s8  }
  0x20   : > { %1639 = sst [smem:[#allocation26_spill]] %s1416_s16  ;;  %p184_p0 = scmp.eq.s32.totalorder %s862_s30, 3 }
  0x21   : > { %1640 = sst [smem:[#allocation27_spill]] %s1419_s17  ;;  %p863_p1 = scmp.ge.s32.totalorder %s1274_s28, 1 }
  0x22   : > { %p191_p2 = scmp.lt.s32.totalorder %s1274_s28, 5  ;;  %p1425_p4 = por %p184_p0, %p183_p13 }
  0x23   : > { %s1643_s3 = sld [smem:[#allocation29_spill]]  ;;  %s1276_s8 = smov [#allocation8]  }
  0x24   : > { %p1429_p5 = pnand %p863_p1, %p191_p2  ;;  %s204_s30 = sshll.u32 %s1276_s8, 4  ;;  %s205_s30 = int_to_ptr.vmem [resolvable:$true] %s204_s30 }
  0x25   : > { %s1277_s7 = smov 128   ;;  %s1278_s6 = smov 8  }
  0x26   : > { %p996_p8 = pneg %p1429_p5  ;;  %p865_p10 = scmp.ge.s32.totalorder %s1274_s28, 4 }
  0x28   : > { %p997_p9 = pnand %p996_p8, %p59_p6  ;;  %217 = sbr.rel (%p865_p10) target bundleno = 74 (0x4a), region = 24 }
  0x29   : > { %s202_s11 = sshll.u32 %s1643_s3, 4  ;;  %s203_s11 = int_to_ptr.hbm [resolvable:$true] %s202_s11 }
  0x2a   : > { %999 = dma.hbm_to_vmem [thread:$0]  (!%p997_p9), %s203_s11, 4096, %s205_s30, [#allocation7], %s1277_s7, %s1277_s7, %s1278_s6  }
  0x2d   : > { %s221_s13 = sand.u32 1, %s1254_s23   ;;  %s868_s14 = sshll.u32 %s1266_s26, 1 }
  0x2e   : > { %s1443_s3 = sshll.u32 %s221_s13, 6  ;;  %s892_s8 = sshll.u32 %s1270_s27, 5 }
  0x2f   : > { %s1446_s17 = sadd.s32 %s892_s8, %s868_s14  ;;  %s225_s7 = scalar_lea.vmem [#allocation3], %s1443_s3 }
  0x30   : > { %s870_s6 = sshll.u32 %s1446_s17, 2  ;;  %s248_s11 = sshll.u32 %s225_s7, 4  ;;  %s249_s11 = int_to_ptr.vmem [resolvable:$true] %s248_s11 }
  0x31   : > { %s1644_s0 = sld [smem:[#allocation28_spill]]  ;;  %s1279_s26 = smov 256  }
  0x32   : > { %s974_s23 = scalar_select %p1391_p3, [#allocation0], [#allocation14] }
  0x33   : > { %975 = sst [smem:[#allocation11]] (%p1391_p3), %s1279_s26  ;;  %s1280_s8 = smov 128  }
  0x34   : > { %s238_s27 = sld [smem:[%s974_s23]]   ;;  %s1281_s17 = smov 2  }
  0x35   : > { %976 = sst [smem:[#allocation11 + $0x1]] (%p1391_p3), %s1280_s8  ;;  %s1282_s7 = smov 64  }
  0x36   : > { %977 = sst [smem:[#allocation11 + $0x2]] (%p1391_p3), %s1281_s17  ;;  %s1283_s30 = smov 4  }
  0x37   : > { %s233_s20 = scalar_lea.hbm %s1644_s0, %s870_s6  ;;  %978 = sst [smem:[#allocation11 + $0x3]] (%p1391_p3), %s1282_s7 }
  0x38   : > { %s246_s14 = sshll.u32 %s233_s20, 4  ;;  %979 = sst [smem:[#allocation11 + $0x4]] (%p1391_p3), %s1282_s7  ;;  %s247_s14 = int_to_ptr.hbm [resolvable:$true] %s246_s14 }
  0x39   : > { %980 = sst [smem:[#allocation11 + $0x5]] (%p1391_p3), %s1283_s30  ;;  %s222_s23 = scalar_lea.sflag [#allocation4], %s221_s13 }
  0x3a   : > { %s871_s16 = sshll.u32 %s238_s27, 26  ;;  %s1284_s0 = smov [#allocation10]  }
  0x3b   : > { %s872_s26 = sadd.s32 134217728, %s871_s16 }
  0x3c   : > { %981 = dma.general (%p1391_p3), %s247_s14, 1024, %s249_s11, %s222_s23, %s1284_s0, [#allocation11], %s872_s26, 0  }
  0x3d   : > { %s271_s20 = sand.u32 1, %s1274_s28   ;;  %s283_s27 = scalar_lea.hbm %s1617_s1, %s870_s6 }
  0x3e   : > { %s982_s7 = scalar_select %p1391_p3, [#allocation0], [#allocation15] }
  0x3f   : > { %s296_s16 = sshll.u32 %s283_s27, 4  ;;  %s275_s13 = scalar_lea.vmem [#allocation6], %s1443_s3  ;;  %s297_s16 = int_to_ptr.hbm [resolvable:$true] %s296_s16 }
  0x40   : > { %s298_s30 = sshll.u32 %s275_s13, 4  ;;  %s288_s0 = sld [smem:[%s982_s7]]   ;;  %s299_s30 = int_to_ptr.vmem [resolvable:$true] %s298_s30 }
  0x41   : > { %s1285_s11 = smov 256   ;;  %s1286_s14 = smov 128  }
  0x42   : > { %983 = sst [smem:[#allocation13]] (%p1391_p3), %s1285_s11  ;;  %s1287_s26 = smov 2  }
  0x43   : > { %984 = sst [smem:[#allocation13 + $0x1]] (%p1391_p3), %s1286_s14  ;;  %s1288_s6 = smov 64  }
  0x44   : > { %985 = sst [smem:[#allocation13 + $0x2]] (%p1391_p3), %s1287_s26  ;;  %s1289_s8 = smov 4  }
  0x45   : > { %986 = sst [smem:[#allocation13 + $0x3]] (%p1391_p3), %s1288_s6  ;;  %s272_s17 = scalar_lea.sflag [#allocation7], %s271_s20 }
  0x46   : > { %s878_s23 = sshll.u32 %s288_s0, 26  ;;  %987 = sst [smem:[#allocation13 + $0x4]] (%p1391_p3), %s1288_s6 }
  0x47   : > { %s879_s3 = sadd.s32 134217728, %s878_s23  ;;  %988 = sst [smem:[#allocation13 + $0x5]] (%p1391_p3), %s1289_s8 }
  0x48   : > { %s1290_s27 = smov [#allocation12]  }
  0x49   : > { %989 = dma.general (%p1391_p3), %s297_s16, 1024, %s299_s30, %s272_s17, %s1290_s27, [#allocation13], %s879_s3, 0  }
  0x4a PF: > { %330 = sbr.rel (%p1429_p5) target bundleno = 327 (0x147), region = 40  ;;  %s332_s7 = sand.u32 (!%p1429_p5), 1, %s1250_s22  }
  0x4b   : > { %s881_s13 = sshll.u32 (!%p1429_p5), %s332_s7, 6  ;;  %s333_s11 = scalar_lea.sflag (!%p1429_p5), [#allocation4], %s332_s7 }
  0x4c   : > { %s1493_s0 = scalar_lea.vmem (!%p1429_p5), [#allocation3], %s881_s13 }
  0x4f   : > { %1217 = dma.done.wait (%p1402_p7), %s333_s11, 1024  }
  0x50   : > { %1219 = vsyncadd (%p1402_p7), %s333_s11, 4294966272  ;;  %s342_s10 = sand.u32 1, %s1377_s29   ;;  %s1500_s16 = scalar_lea.vmem [#allocation6], %s881_s13 }
  0x51   : > { %s343_s20 = scalar_lea.sflag [#allocation7], %s342_s10 }
  0x52   : > { %1221 = dma.done.wait (%p1402_p7), %s343_s20, 1024  }
  0x53   : > { %1223 = vsyncadd (%p1402_p7), %s343_s20, 4294966272 }
  0x54   : > { %1225 = dma.done.wait (%p59_p6), [#allocation7], 4096  }
  0x55   : > { %1227 = vsyncadd (%p59_p6), [#allocation7], 4294963200  ;;  %s385_s9 = sand.u32 1, %s1238_s19   ;;  %p392_p3 = scmp.lt.s32.totalorder %s1262_s25, 1 }
  0x56   : > { %s1514_s30 = sshll.u32 %s385_s9, 3  ;;  %p886_p6 = scmp.ne.s32.totalorder %s1258_s24, 0 }
  0x57   : > { %s393_s14 = scalar_select %p392_p3, %s1262_s25, 1 }
  0x58   : > { %s387_s3 = scalar_lea.vmem [#allocation9], %s1514_s30  ;;  %399 = sbr.rel (%p886_p6) target bundleno = 96 (0x60), region = 56 }
  0x59   : > { %s885_s26 = sshll.u32 %s393_s14, 3 }
  0x5a   : > { %s1520_s23 = scalar_lea.vmem %s1618_s2, %s885_s26 }
  0x5d   : > { %v1291_v0 = vmov 0.0  }
  0x5e   : > { %400 = vst [vmem:[#allocation2] sm:$0xff] %v1291_v0 }
  0x5f   : > { %401 = vst [vmem:[#allocation2 + $0x8] sm:$0xff] %v1291_v0 }
  0x60 PF: > { %v895_v1 = vld [vmem:[%s1493_s0] sm:$0xff]   ;;  %v958_v2 = vld [vmem:[%s1493_s0 + $0x8] sm:$0xff]   ;;  %v959_v7 = vld [vmem:[%s1493_s0 + $0x10] sm:$0xff]   ;;  %vm499_vm0 = vcmask 1041409   ;;  %vm501_vm1 = vcmask 1042434   ;;  %vm503_vm2 = vcmask 1043459  }
  0x61   : > { %v896_v3 = vunpack.c.l.bf16 %v895_v1  ;;  %v897_v4 = vunpack.c.h.bf16 %v895_v1  ;;  %v900_v5 = vunpack.c.l.bf16 %v958_v2  ;;  %v901_v6 = vunpack.c.h.bf16 %v958_v2  ;;  %v960_v8 = vld [vmem:[%s1493_s0 + $0x18] sm:$0xff]   ;;  %v961_v9 = vld [vmem:[%s1493_s0 + $0x20] sm:$0xff]   ;;  %v962_v14 = vld [vmem:[%s1493_s0 + $0x28] sm:$0xff]   ;;  %p887_p7 = scmp.ne.s32.totalorder %s1258_s24, 1 }
  0x62   : > { %v904_v10 = vunpack.c.l.bf16 %v959_v7  ;;  %v905_v11 = vunpack.c.h.bf16 %v959_v7  ;;  %v908_v12 = vunpack.c.l.bf16 %v960_v8  ;;  %v909_v13 = vunpack.c.h.bf16 %v960_v8  ;;  %v963_v15 = vld [vmem:[%s1493_s0 + $0x30] sm:$0xff]   ;;  %v964_v16 = vld [vmem:[%s1493_s0 + $0x38] sm:$0xff]  }
  0x63   : > { %v912_v17 = vunpack.c.l.bf16 %v961_v9  ;;  %v913_v18 = vunpack.c.h.bf16 %v961_v9  ;;  %v916_v19 = vunpack.c.l.bf16 %v962_v14  ;;  %v917_v20 = vunpack.c.h.bf16 %v962_v14 }
  0x64   : > { %v920_v21 = vunpack.c.l.bf16 %v963_v15  ;;  %v921_v22 = vunpack.c.h.bf16 %v963_v15  ;;  %v924_v23 = vunpack.c.l.bf16 %v964_v16  ;;  %v925_v24 = vunpack.c.h.bf16 %v964_v16 }
  0x65   : > { %v435_v25 = vadd.f32 %v897_v4, %v896_v3  ;;  %v442_v26 = vadd.f32 %v901_v6, %v900_v5  ;;  %v449_v27 = vadd.f32 %v905_v11, %v904_v10  ;;  %v456_v28 = vadd.f32 %v909_v13, %v908_v12  ;;  %v927_v13 = vld [vmem:[%s1500_s16] sm:$0xff]  }
  0x66   : > { %v463_v29 = vadd.f32 %v913_v18, %v912_v17  ;;  %v470_v30 = vadd.f32 %v917_v20, %v916_v19  ;;  %v477_v31 = vadd.f32 %v921_v22, %v920_v21  ;;  %v484_v32 = vadd.f32 %v925_v24, %v924_v23  ;;  %v965_v18 = vld [vmem:[%s1500_s16 + $0x8] sm:$0xff]   ;;  %v966_v19 = vld [vmem:[%s1500_s16 + $0x10] sm:$0xff]   ;;  %v967_v21 = vld [vmem:[%s1500_s16 + $0x18] sm:$0xff]  }
  0x67   : > { %v436_v33 = vrot.slane %v435_v25, 4  ;;  %v443_v34 = vrot.slane %v442_v26, 4  ;;  %v450_v35 = vrot.slane %v449_v27, 4  ;;  %v457_v36 = vrot.slane %v456_v28, 4 }
  0x68   : > { %v464_v37 = vrot.slane %v463_v29, 4  ;;  %v471_v38 = vrot.slane %v470_v30, 4  ;;  %v478_v39 = vrot.slane %v477_v31, 4  ;;  %v485_v40 = vrot.slane %v484_v32, 4 }
  0x69   : > { %v437_v41 = vadd.f32 %v436_v33, %v435_v25  ;;  %v444_v42 = vadd.f32 %v443_v34, %v442_v26  ;;  %v451_v43 = vadd.f32 %v450_v35, %v449_v27  ;;  %v458_v44 = vadd.f32 %v457_v36, %v456_v28  ;;  %v968_v25 = vld [vmem:[%s1500_s16 + $0x20] sm:$0xff]   ;;  %v969_v26 = vld [vmem:[%s1500_s16 + $0x28] sm:$0xff]   ;;  %v971_v36 = vld [vmem:[%s1500_s16 + $0x38] sm:$0xff]  }
  0x6a   : > { %v465_v45 = vadd.f32 %v464_v37, %v463_v29  ;;  %v472_v46 = vadd.f32 %v471_v38, %v470_v30  ;;  %v479_v47 = vadd.f32 %v478_v39, %v477_v31  ;;  %v486_v48 = vadd.f32 %v485_v40, %v484_v32  ;;  %v970_v31 = vld [vmem:[%s1500_s16 + $0x30] sm:$0xff]  }
  0x6b   : > { %v438_v49 = vrot.slane %v437_v41, 2  ;;  %v445_v50 = vrot.slane %v444_v42, 2  ;;  %v452_v51 = vrot.slane %v451_v43, 2  ;;  %v459_v52 = vrot.slane %v458_v44, 2  ;;  %v402_v37 = vld [vmem:[#allocation2] sm:$0xff] }
  0x6c   : > { %v466_v53 = vrot.slane %v465_v45, 2  ;;  %v473_v54 = vrot.slane %v472_v46, 2  ;;  %v480_v55 = vrot.slane %v479_v47, 2  ;;  %v487_v56 = vrot.slane %v486_v48, 2 }
  0x6d   : > { %v439_v57 = vadd.f32 %v438_v49, %v437_v41  ;;  %v446_v58 = vadd.f32 %v445_v50, %v444_v42  ;;  %v453_v59 = vadd.f32 %v452_v51, %v451_v43  ;;  %v460_v60 = vadd.f32 %v459_v52, %v458_v44 }
  0x6e   : > { %v467_v61 = vadd.f32 %v466_v53, %v465_v45  ;;  %v474_v62 = vadd.f32 %v473_v54, %v472_v46  ;;  %v481_v63 = vadd.f32 %v480_v55, %v479_v47  ;;  %v488_v0 = vadd.f32 %v487_v56, %v486_v48 }
  0x6f   : > { %v440_v1 = vrot.slane %v439_v57, 1  ;;  %v447_v2 = vrot.slane %v446_v58, 1  ;;  %v454_v3 = vrot.slane %v453_v59, 1  ;;  %v461_v4 = vrot.slane %v460_v60, 1 }
  0x70   : > { %v468_v5 = vrot.slane %v467_v61, 1  ;;  %v475_v6 = vrot.slane %v474_v62, 1  ;;  %v482_v7 = vrot.slane %v481_v63, 1  ;;  %v489_v8 = vrot.slane %v488_v0, 1 }
  0x71   : > { %v441_v9 = vadd.f32 %v440_v1, %v439_v57  ;;  %v448_v10 = vadd.f32 %v447_v2, %v446_v58  ;;  %v455_v11 = vadd.f32 %v454_v3, %v453_v59  ;;  %v462_v12 = vadd.f32 %v461_v4, %v460_v60 }
  0x72   : > { %v469_v14 = vadd.f32 %v468_v5, %v467_v61  ;;  %v476_v15 = vadd.f32 %v475_v6, %v474_v62  ;;  %v483_v16 = vadd.f32 %v482_v7, %v481_v63  ;;  %v490_v17 = vadd.f32 %v489_v8, %v488_v0 }
  0x73   : > { %v500_v20 = vsel %vm499_vm0, %v448_v10, %v441_v9  ;;  %vm505_vm3 = vcmask 1044484   ;;  %vm507_vm4 = vcmask 1045509   ;;  %vm509_vm5 = vcmask 1046534  }
  0x74   : > { %v502_v22 = vsel %vm501_vm1, %v455_v11, %v500_v20  ;;  %vm511_vm6 = vcmask 1047559   ;;  %v928_v23 = vunpack.c.l.bf16 %v927_v13  ;;  %v929_v24 = vunpack.c.h.bf16 %v927_v13 }
  0x75   : > { %v504_v27 = vsel %vm503_vm2, %v462_v12, %v502_v22  ;;  %v932_v28 = vunpack.c.l.bf16 %v965_v18  ;;  %v933_v29 = vunpack.c.h.bf16 %v965_v18  ;;  %v936_v30 = vunpack.c.l.bf16 %v966_v19 }
  0x76   : > { %v506_v32 = vsel %vm505_vm3, %v469_v14, %v504_v27  ;;  %v937_v33 = vunpack.c.h.bf16 %v966_v19  ;;  %v940_v34 = vunpack.c.l.bf16 %v967_v21  ;;  %v941_v35 = vunpack.c.h.bf16 %v967_v21 }
  0x77   : > { %v508_v38 = vsel %vm507_vm4, %v476_v15, %v506_v32  ;;  %v944_v39 = vunpack.c.l.bf16 %v968_v25  ;;  %v945_v40 = vunpack.c.h.bf16 %v968_v25  ;;  %v948_v41 = vunpack.c.l.bf16 %v969_v26 }
  0x78   : > { %v510_v42 = vsel %vm509_vm5, %v483_v16, %v508_v38  ;;  %v949_v43 = vunpack.c.h.bf16 %v969_v26  ;;  %v952_v44 = vunpack.c.l.bf16 %v970_v31  ;;  %v953_v45 = vunpack.c.h.bf16 %v970_v31 }
  0x79   : > { %v512_v46 = vsel %vm511_vm6, %v490_v17, %v510_v42  ;;  %v956_v47 = vunpack.c.l.bf16 %v971_v36  ;;  %v957_v48 = vunpack.c.h.bf16 %v971_v36  ;;  %v549_v49 = vadd.f32 %v929_v24, %v928_v23 }
  0x7a   : > { %v514_v50 = vadd.f32 %v512_v46, %v402_v37  ;;  %v556_v51 = vadd.f32 %v933_v29, %v932_v28  ;;  %v563_v52 = vadd.f32 %v937_v33, %v936_v30  ;;  %v570_v53 = vadd.f32 %v941_v35, %v940_v34  ;;  %v516_v46 = vld [vmem:[#allocation2 + $0x8] sm:$0xff] }
  0x7b   : > { %v550_v54 = vrot.slane %v549_v49, 4  ;;  %v577_v55 = vadd.f32 %v945_v40, %v944_v39  ;;  %v584_v56 = vadd.f32 %v949_v43, %v948_v41  ;;  %v591_v57 = vadd.f32 %v953_v45, %v952_v44 }
  0x7c   : > { %515 = vst [vmem:[#allocation2] sm:$0xff] %v514_v50  ;;  %v557_v58 = vrot.slane %v556_v51, 4  ;;  %v564_v59 = vrot.slane %v563_v52, 4  ;;  %v571_v60 = vrot.slane %v570_v53, 4  ;;  %v598_v61 = vadd.f32 %v957_v48, %v956_v47 }
  0x7d   : > { %v551_v62 = vadd.f32 %v550_v54, %v549_v49  ;;  %v578_v63 = vrot.slane %v577_v55, 4  ;;  %v585_v0 = vrot.slane %v584_v56, 4  ;;  %v592_v1 = vrot.slane %v591_v57, 4 }
  0x7e   : > { %v558_v2 = vadd.f32 %v557_v58, %v556_v51  ;;  %v565_v3 = vadd.f32 %v564_v59, %v563_v52  ;;  %v572_v4 = vadd.f32 %v571_v60, %v570_v53  ;;  %v599_v5 = vrot.slane %v598_v61, 4 }
  0x7f   : > { %v552_v6 = vrot.slane %v551_v62, 2  ;;  %v579_v7 = vadd.f32 %v578_v63, %v577_v55  ;;  %v586_v8 = vadd.f32 %v585_v0, %v584_v56  ;;  %v593_v9 = vadd.f32 %v592_v1, %v591_v57 }
  0x80   : > { %v559_v10 = vrot.slane %v558_v2, 2  ;;  %v566_v11 = vrot.slane %v565_v3, 2  ;;  %v573_v12 = vrot.slane %v572_v4, 2  ;;  %v600_v13 = vadd.f32 %v599_v5, %v598_v61 }
  0x81   : > { %v553_v14 = vadd.f32 %v552_v6, %v551_v62  ;;  %v580_v15 = vrot.slane %v579_v7, 2  ;;  %v587_v16 = vrot.slane %v586_v8, 2  ;;  %v594_v17 = vrot.slane %v593_v9, 2 }
  0x82   : > { %v560_v18 = vadd.f32 %v559_v10, %v558_v2  ;;  %v567_v19 = vadd.f32 %v566_v11, %v565_v3  ;;  %v574_v20 = vadd.f32 %v573_v12, %v572_v4  ;;  %v601_v21 = vrot.slane %v600_v13, 2 }
  0x83   : > { %v554_v22 = vrot.slane %v553_v14, 1  ;;  %v581_v23 = vadd.f32 %v580_v15, %v579_v7  ;;  %v588_v24 = vadd.f32 %v587_v16, %v586_v8  ;;  %v595_v25 = vadd.f32 %v594_v17, %v593_v9 }
  0x84   : > { %v561_v26 = vrot.slane %v560_v18, 1  ;;  %v568_v27 = vrot.slane %v567_v19, 1  ;;  %v575_v28 = vrot.slane %v574_v20, 1  ;;  %v602_v29 = vadd.f32 %v601_v21, %v600_v13 }
  0x85   : > { %v555_v30 = vadd.f32 %v554_v22, %v553_v14  ;;  %v582_v31 = vrot.slane %v581_v23, 1  ;;  %v589_v32 = vrot.slane %v588_v24, 1  ;;  %v596_v33 = vrot.slane %v595_v25, 1 }
  0x86   : > { %v562_v34 = vadd.f32 %v561_v26, %v560_v18  ;;  %v569_v35 = vadd.f32 %v568_v27, %v567_v19  ;;  %v576_v36 = vadd.f32 %v575_v28, %v574_v20  ;;  %v603_v37 = vrot.slane %v602_v29, 1 }
  0x87   : > { %v583_v38 = vadd.f32 %v582_v31, %v581_v23  ;;  %v590_v39 = vadd.f32 %v589_v32, %v588_v24  ;;  %v597_v41 = vadd.f32 %v596_v33, %v595_v25 }
  0x88   : > { %v613_v40 = vsel %vm499_vm0, %v562_v34, %v555_v30  ;;  %v604_v43 = vadd.f32 %v603_v37, %v602_v29 }
  0x89   : > { %v614_v42 = vsel %vm501_vm1, %v569_v35, %v613_v40 }
  0x8a   : > { %v615_v44 = vsel %vm503_vm2, %v576_v36, %v614_v42 }
  0x8b   : > { %v616_v45 = vsel %vm505_vm3, %v583_v38, %v615_v44 }
  0x8c   : > { %v617_v47 = vsel %vm507_vm4, %v590_v39, %v616_v45 }
  0x8d   : > { %v618_v48 = vsel %vm509_vm5, %v597_v41, %v617_v47  ;;  %626 = sbr.rel (%p887_p7) target bundleno = 312 (0x138), region = 60 }
  0x8e   : > { %v619_v49 = vsel %vm511_vm6, %v604_v43, %v618_v48 }
  0x8f   : > { %v621_v50 = vadd.f32 %v619_v49, %v516_v46 }
  0x91   : > { %622 = vst [vmem:[#allocation2 + $0x8] sm:$0xff] %v621_v50 }
  0x92   : > { %v644_v51 = vld [vmem:[#allocation8 + $0x78] sm:$0xff]  ;;  %v643_v53 = vld [vmem:[#allocation8 + $0x70] sm:$0xff]  ;;  %v642_v55 = vld [vmem:[#allocation8 + $0x68] sm:$0xff]  ;;  %v1292_v57 = vmov 0  }
  0x93   : > { %v660_v52 = vld [vmem:[#allocation8 + $0xf8] sm:$0xff]  ;;  %661 = vmatpush.msra.mxu0 %v644_v51  ;;  %v659_v54 = vld [vmem:[#allocation8 + $0xf0] sm:$0xff]  ;;  %v658_v56 = vld [vmem:[#allocation8 + $0xe8] sm:$0xff]  ;;  %1112 = vset.pattern.permute.xlu0 %v1292_v57 }
  0x94   : > { %681 = vmatpush.msra.mxu1 %v660_v52  ;;  %v641_v58 = vld [vmem:[#allocation8 + $0x60] sm:$0xff]  ;;  %v640_v60 = vld [vmem:[#allocation8 + $0x58] sm:$0xff]  ;;  %v639_v62 = vld [vmem:[#allocation8 + $0x50] sm:$0xff] }
  0x95   : > { %662 = vmatpush.msra.mxu0 %v643_v53  ;;  %v657_v59 = vld [vmem:[#allocation8 + $0xe0] sm:$0xff]  ;;  %v656_v61 = vld [vmem:[#allocation8 + $0xd8] sm:$0xff]  ;;  %v655_v63 = vld [vmem:[#allocation8 + $0xd0] sm:$0xff] }
  0x96   : > { %682 = vmatpush.msra.mxu1 %v659_v54  ;;  %v638_v0 = vld [vmem:[#allocation8 + $0x48] sm:$0xff]  ;;  %v701_v2 = vld [vmem:[%s1520_s23] sm:$0xff]  ;;  %v637_v3 = vld [vmem:[#allocation8 + $0x40] sm:$0xff] }
  0x97   : > { %663 = vmatpush.msra.mxu0 %v642_v55  ;;  %v654_v1 = vld [vmem:[#allocation8 + $0xc8] sm:$0xff]  ;;  %v653_v4 = vld [vmem:[#allocation8 + $0xc0] sm:$0xff]  ;;  %704 = vperm.xlu0 %1112, %v701_v2   ;;  %v636_v5 = vld [vmem:[#allocation8 + $0x38] sm:$0xff] }
  0x98   : > { %683 = vmatpush.msra.mxu1 %v658_v56  ;;  %v652_v6 = vld [vmem:[#allocation8 + $0xb8] sm:$0xff]  ;;  %v635_v7 = vld [vmem:[#allocation8 + $0x30] sm:$0xff]  ;;  %v634_v9 = vld [vmem:[#allocation8 + $0x28] sm:$0xff] }
  0x99   : > { %664 = vmatpush.msra.mxu0 %v641_v58  ;;  %v651_v8 = vld [vmem:[#allocation8 + $0xb0] sm:$0xff]  ;;  %v650_v10 = vld [vmem:[#allocation8 + $0xa8] sm:$0xff]  ;;  %v633_v11 = vld [vmem:[#allocation8 + $0x20] sm:$0xff] }
  0x9a   : > { %684 = vmatpush.msra.mxu1 %v657_v59  ;;  %v649_v12 = vld [vmem:[#allocation8 + $0xa0] sm:$0xff]  ;;  %v632_v13 = vld [vmem:[#allocation8 + $0x18] sm:$0xff]  ;;  %v631_v15 = vld [vmem:[#allocation8 + $0x10] sm:$0xff] }
  0x9b   : > { %665 = vmatpush.msra.mxu0 %v640_v60  ;;  %v648_v14 = vld [vmem:[#allocation8 + $0x98] sm:$0xff]  ;;  %v647_v16 = vld [vmem:[#allocation8 + $0x90] sm:$0xff]  ;;  %v630_v17 = vld [vmem:[#allocation8 + $0x8] sm:$0xff] }
  0x9c   : > { %685 = vmatpush.msra.mxu1 %v656_v61  ;;  %v646_v18 = vld [vmem:[#allocation8 + $0x88] sm:$0xff]  ;;  %v629_v19 = vld [vmem:[#allocation8] sm:$0xff]  ;;  %v627_v21 = vld [vmem:[#allocation2] sm:$0xff] }
  0x9d   : > { %666 = vmatpush.msra.mxu0 %v639_v62  ;;  %v645_v20 = vld [vmem:[#allocation8 + $0x80] sm:$0xff]  ;;  %v628_v22 = vld [vmem:[#allocation2 + $0x8] sm:$0xff]  ;;  %v1113_v27 = vld [vmem:[%s1620_s4] ss:$0 sm:$0xff] }
  0x9e   : > { %686 = vmatpush.msra.mxu1 %v655_v63 }
  0x9f   : > { %667 = vmatpush.msra.mxu0 %v638_v0 }
  0xa0   : > { %687 = vmatpush.msra.mxu1 %v654_v1 }
  0xa1   : > { %668 = vmatpush.msra.mxu0 %v637_v3 }
  0xa2   : > { %688 = vmatpush.msra.mxu1 %v653_v4 }
  0xa3   : > { %669 = vmatpush.msra.mxu0 %v636_v5 }
  0xa4   : > { %689 = vmatpush.msra.mxu1 %v652_v6 }
  0xa5   : > { %670 = vmatpush.msra.mxu0 %v635_v7 }
  0xa6   : > { %690 = vmatpush.msra.mxu1 %v651_v8 }
  0xa7   : > { %671 = vmatpush.msra.mxu0 %v634_v9 }
  0xa8   : > { %691 = vmatpush.msra.mxu1 %v650_v10 }
  0xa9   : > { %672 = vmatpush.msra.mxu0 %v633_v11 }
  0xaa   : > { %692 = vmatpush.msra.mxu1 %v649_v12 }
  0xab   : > { %673 = vmatpush.msra.mxu0 %v632_v13 }
  0xac   : > { %693 = vmatpush.msra.mxu1 %v648_v14 }
  0xad   : > { %674 = vmatpush.msra.mxu0 %v631_v15 }
  0xae   : > { %694 = vmatpush.msra.mxu1 %v647_v16 }
  0xaf   : > { %675 = vmatpush.msra.mxu0 %v630_v17 }
  0xb0   : > { %695 = vmatpush.msra.mxu1 %v646_v18 }
  0xb1   : > { %676 = vmatpush.msra.mxu0 %v629_v19 }
  0xb2   : > { %696 = vmatpush.msra.mxu1 %v645_v20  ;;  %677 = vmatmul.f32.vlgmr.msra.gmra.mxu0 %v627_v21 }
  0xb3   : > { %697 = vmatmul.f32.vlgmr.msra.gmra.mxu1 %v628_v22 }
 0x109   : > { %v705_v23 = vpop.permute.xlu0 %704 }
 0x12f   : > { %v678_v24 = vpop.f32.mrf.mxu0 }
 0x130   : > { %v698_v25 = vpop.f32.mrf.mxu1 }
 0x131   : > { %v699_v26 = vadd.f32 %v698_v25, %v678_v24 }
 0x133   : > { %v707_v28 = vmul.f32 %v705_v23, %v699_v26 }
 0x135   : > { %v712_v29 = vadd.f32 %v1113_v27, %v707_v28 }
 0x137   : > { %713 = vst [vmem:[%s387_s3] sm:$0xff] %v712_v29 }
 0x138 PF: > { %s889_s8 = sshll.u32 %s1262_s25, 3  ;;  %s727_s13 = sshll.u32 %s387_s3, 4  ;;  %s728_s13 = int_to_ptr.vmem [resolvable:$true] %s727_s13 }
 0x139   : > { %s725_s7 = scalar_lea.hbm %s1621_s5, %s889_s8  ;;  %s715_s0 = scalar_lea.sflag [#allocation5], %s385_s9 }
 0x13a   : > { %s729_s11 = sshll.u32 %s725_s7, 4  ;;  %s1164_s14 = scalar_lea.hbm %s1621_s5, 16  ;;  %s730_s11 = int_to_ptr.hbm [resolvable:$true] %s729_s11 }
 0x13b   : > { %s1158_s10 = sshra.s32 %s730_s11, 4  ;;  %s1159_s10 = int_to_ptr.hbm [resolvable:$true] %s1158_s10 }
 0x13c   : > { %s1160_s20 = scalar_lea.hbm %s1159_s10, 8  ;;  %p1165_p1 = scmp.lt.s32.totalorder %s1159_s10, %s1621_s5 }
 0x13d   : > { %p1161_p11 = scmp.ne.s32.totalorder %s1159_s10, %s1160_s20  ;;  %p1166_p2 = scmp.lt.s32.totalorder %s1164_s14, %s1160_s20 }
 0x13f   : > { %p1162_p13 = pnand %p1161_p11, %p1411_p12  ;;  %p1167_p5 = por %p1166_p2, %p1165_p1 }
 0x141   : > { %p1163_p0 = pneg %p1162_p13 }
 0x143   : > { %p1168_p8 = pnand %p1167_p5, %p1163_p0 }
 0x145   : > { %1171 = shalt.err (!%p1168_p8)
}
 0x146   : > { %994 = dma.vmem_to_hbm [thread:$0]  (%p1411_p12), %s728_s13, 128, %s730_s11, %s715_s0  }
 0x147 PF: > { %p1006_p9 = scmp.ge.s32.totalorder %s1274_s28, 2  ;;  %s741_s9 = sand.u32 1, %s1234_s18  }
 0x148   : > { %s742_s30 = scalar_lea.sflag [#allocation5], %s741_s9 }
 0x149   : > { %p1001_p10 = pnand %p1006_p9, %p1425_p4 }
 0x14b   : > { %p1002_p3 = pneg %p1001_p10 }
 0x14d   : > { %1229 = dma.done.wait (%p1002_p3), %s742_s30, 128  }
 0x14e   : > { %1231 = vsyncadd (%p1002_p3), %s742_s30, 4294967168  ;;  %s24_s28 = sadd.s32 1, %s1274_s28   ;;  %s1645_s6 = sld [smem:[#allocation20_spill]] }
 0x14f   : > { %p21_p6 = scmp.ge.s32.totalorder %s24_s28, 6   ;;  %s1646_s20 = sld [smem:[#allocation26_spill]] }
 0x150   : > { %s1647_s15 = sld [smem:[#allocation21_spill]]  ;;  %s1653_s18 = smov %s1238_s19 }
 0x151   : > { %s1648_s23 = sld [smem:[#allocation27_spill]]  ;;  %s1655_s21 = smov %s1250_s22 }
 0x152   : > { %s1649_s24 = sld [smem:[#allocation22_spill]]  ;;  %23 = sbr.rel (!%p21_p6) target bundleno = 14 (0xe), region = 123 }
 0x153   : > { %s1650_s25 = sld [smem:[#allocation23_spill]] }
 0x154   : > { %s1651_s26 = sld [smem:[#allocation24_spill]]  ;;  %s1654_s19 = smov %s1645_s6 }
 0x155   : > { %s1652_s27 = sld [smem:[#allocation25_spill]] }
 0x156   : > { %s1656_s22 = smov %s1647_s15 }
 0x157   :  { %748 = vsyncpa [#allocation4], 1 }
 0x158   :  { %750 = vsyncpa [#allocation4 + $0x1], 1 }
 0x159   :  { %751 = vsyncpa [#allocation7], 1 }
 0x15a   :  { %753 = vsyncpa [#allocation7 + $0x1], 1 }
 0x15b   :  { %754 = vsyncpa [#allocation5], 1 }
 0x15c   :  { %756 = vsyncpa [#allocation5 + $0x1], 1 }

</bundles_post_ra>
